<compile_context>
chip_gen: v6e
topology: v6e:2x2x1
jax: 0.10.0
libtpu: 0.0.40
codegen_flags: <defaults>
</compile_context>

<pallas_src>
import jax
import jax.numpy as jnp
import numpy as np
from jax.experimental import pallas as pl
from jax.experimental.pallas import tpu as pltpu

INPUT_SIZE = 4      # CartPole-v1 observation_space.shape[0]
HIDDEN = 256
OUTPUT_SIZE = 2     # CartPole-v1 action_space.n
LANE = 128          # TPU lane width -> lane-dense padded output
TB_MAX = 128        # batch tile size (MXU M rows per grid step)


def _round_up(n, m):
    return ((n + m - 1) // m) * m


def _mlp_kernel(x_ref, w1_ref, b1_ref, w2_ref, b2_ref, wq_ref, bq_ref, q_ref):
    x = x_ref[...]                                   # (TB, 4)   f32
    w1 = w1_ref[...]                                 # (4, 256)  f32

    # ---- Layer 1 (K = 4): unrolled VPU broadcast-FMAs, f32 ----------------
    h1 = x[:, 0:1] * w1[0:1, :]
    for k in range(1, INPUT_SIZE):                   # static unroll
        h1 = h1 + x[:, k:k + 1] * w1[k:k + 1, :]
    h1 = jnp.maximum(h1 + b1_ref[...], 0.0)          # (TB, 256) f32

    # ---- Layer 2: bf16 MXU matmul, f32 accumulation -----------------------
    h2 = jnp.dot(h1.astype(jnp.bfloat16), w2_ref[...],
                 preferred_element_type=jnp.float32)
    h2 = jnp.maximum(h2 + b2_ref[...], 0.0)          # (TB, 256) f32

    # ---- Output layer: lane-dense (256, 128) padded projection ------------
    q = jnp.dot(h2.astype(jnp.bfloat16), wq_ref[...],
                preferred_element_type=jnp.float32)
    q_ref[...] = (q + bq_ref[...]).astype(q_ref.dtype)   # (TB, 128) f32


def prepare_params(params):
    """One-time conversion of f32 (in, out)-layout params into kernel layout:
    bf16 w2/wq, lane-padded (256,128)/(1,128) output weights/bias."""
    w1, b1, w2, b2, wq, bq = params
    wq_p = jnp.zeros((HIDDEN, LANE), jnp.float32).at[:, :OUTPUT_SIZE].set(wq)
    bq_p = jnp.zeros((1, LANE), jnp.float32).at[:, :OUTPUT_SIZE].set(
        bq.reshape(1, OUTPUT_SIZE))
    return (
        w1.astype(jnp.float32),
        b1.reshape(1, HIDDEN).astype(jnp.float32),
        w2.astype(jnp.bfloat16),
        b2.reshape(1, HIDDEN).astype(jnp.float32),
        wq_p.astype(jnp.bfloat16),
        bq_p.astype(jnp.float32),
    )


@jax.jit
def agent_forward(state, kparams):
    """state: (B, 4) f32 -> q: (B, 2) f32."""
    w1, b1, w2, b2, wq_p, bq_p = kparams
    B = state.shape[0]
    B_pad = _round_up(B, 8) if B <= TB_MAX else _round_up(B, TB_MAX)
    tb = min(B_pad, TB_MAX)
    if B_pad != B:
        state = jnp.pad(state, ((0, B_pad - B), (0, 0)))

    cost = pl.CostEstimate(
        flops=2 * B_pad * (INPUT_SIZE * HIDDEN + HIDDEN * HIDDEN + HIDDEN * LANE),
        transcendentals=0,
        bytes_accessed=(B_pad * INPUT_SIZE * 4            # x
                        + INPUT_SIZE * HIDDEN * 4 + HIDDEN * 4   # w1, b1
                        + HIDDEN * HIDDEN * 2 + HIDDEN * 4       # w2 (bf16), b2
                        + HIDDEN * LANE * 2 + LANE * 4           # wq (bf16), bq
                        + B_pad * LANE * 4),                     # out
    )

    q_pad = pl.pallas_call(
        _mlp_kernel,
        out_shape=jax.ShapeDtypeStruct((B_pad, LANE), jnp.float32),
        grid=(B_pad // tb,),
        in_specs=[
            pl.BlockSpec((tb, INPUT_SIZE), lambda i: (i, 0)),   # x: batch-tiled
            pl.BlockSpec((INPUT_SIZE, HIDDEN), lambda i: (0, 0)),  # weights stay
            pl.BlockSpec((1, HIDDEN), lambda i: (0, 0)),           # VMEM-resident
            pl.BlockSpec((HIDDEN, HIDDEN), lambda i: (0, 0)),      # across batch
            pl.BlockSpec((1, HIDDEN), lambda i: (0, 0)),           # tiles
            pl.BlockSpec((HIDDEN, LANE), lambda i: (0, 0)),
            pl.BlockSpec((1, LANE), lambda i: (0, 0)),
        ],
        out_specs=pl.BlockSpec((tb, LANE), lambda i: (i, 0)),
        compiler_params=pltpu.CompilerParams(
            dimension_semantics=("parallel",)),     # 2 TCs on v7x share batch
        cost_estimate=cost,
    )(state, w1, b1, w2, b2, wq_p, bq_p)

    return q_pad[:B, :OUTPUT_SIZE]


def init_params(key):
    """Deterministic init mirroring nn.Linear's default U(-1/sqrt(fan_in), .)."""
    ks = jax.random.split(key, 6)

    def linear(kw, kb, fan_in, fan_out):
        bound = 1.0 / jnp.sqrt(jnp.float32(fan_in))
        w = jax.random.uniform(kw, (fan_in, fan_out), jnp.float32, -bound, bound)
        b = jax.random.uniform(kb, (1, fan_out), jnp.float32, -bound, bound)
        return w, b

    w1, b1 = linear(ks[0], ks[1], INPUT_SIZE, HIDDEN)
    w2, b2 = linear(ks[2], ks[3], HIDDEN, HIDDEN)
    wq, bq = linear(ks[4], ks[5], HIDDEN, OUTPUT_SIZE)
    return (w1, b1, w2, b2, wq, bq)


if __name__ == "__main__":
    key = jax.random.PRNGKey(0)
    k_params, k_state = jax.random.split(key)

    params = init_params(k_params)
    kparams = prepare_params(params)

    # Small batch of CartPole states, shape (8, 4).
    state = jax.random.normal(k_state, (8, INPUT_SIZE), dtype=jnp.float32)

    q = agent_forward(state, kparams)
    q = jax.block_until_ready(q)
    assert q.shape == (8, OUTPUT_SIZE)

    # Reference check (same math as the PyTorch forward, with the same bf16
    # weight/activation quantization the kernel uses; f32 accumulation).
    w1, b1, w2, b2, wq, bq = (np.asarray(p) for p in params)
    bf = lambda a: np.asarray(
        jnp.asarray(a).astype(jnp.bfloat16).astype(jnp.float32))
    sn = np.asarray(state)
    h1 = np.maximum(sn @ w1 + b1, 0.0)
    h2 = np.maximum(bf(h1) @ bf(w2) + b2, 0.0)
    q_ref = bf(h2) @ bf(wq) + bq
    assert np.allclose(np.asarray(q), q_ref, atol=1e-3, rtol=1e-3)

    # Also verify a larger (multi-tile, non-multiple-of-128) batch path runs.
    big_state = jax.random.normal(jax.random.PRNGKey(1), (300, INPUT_SIZE),
                                  dtype=jnp.float32)
    q_big = jax.block_until_ready(agent_forward(big_state, kparams))
    assert q_big.shape == (300, OUTPUT_SIZE)

    print("KERNEL_OK")
</pallas_src>

<mosaic_0001>
module attributes {stable_mosaic.version = 11 : i64} {
  func.func @_mlp_kernel(%arg0: i32, %arg1: memref<8x4xf32, #tpu.memory_space<vmem>>, %arg2: memref<4x256xf32, #tpu.memory_space<vmem>>, %arg3: memref<1x256xf32, #tpu.memory_space<vmem>>, %arg4: memref<256x256xbf16, #tpu.memory_space<vmem>>, %arg5: memref<1x256xf32, #tpu.memory_space<vmem>>, %arg6: memref<256x128xbf16, #tpu.memory_space<vmem>>, %arg7: memref<1x128xf32, #tpu.memory_space<vmem>>, %arg8: memref<8x128xf32, #tpu.memory_space<vmem>>) attributes {dimension_semantics = [#tpu.dimension_semantics<parallel>], iteration_bounds = array<i64: 1>, scalar_prefetch = 0 : i64, scratch_operands = 0 : i64, tpu.core_type = #tpu.core_type<tc>, window_params = [{transform_indices = @transform_0, window_bounds = array<i64: 8, 4>}, {pipeline_mode = #tpu.pipeline_mode<synchronous>, transform_indices = @transform_1, window_bounds = array<i64: 4, 256>}, {pipeline_mode = #tpu.pipeline_mode<synchronous>, transform_indices = @transform_2, window_bounds = array<i64: 1, 256>}, {pipeline_mode = #tpu.pipeline_mode<synchronous>, transform_indices = @transform_3, window_bounds = array<i64: 256, 256>}, {pipeline_mode = #tpu.pipeline_mode<synchronous>, transform_indices = @transform_4, window_bounds = array<i64: 1, 256>}, {pipeline_mode = #tpu.pipeline_mode<synchronous>, transform_indices = @transform_5, window_bounds = array<i64: 256, 128>}, {pipeline_mode = #tpu.pipeline_mode<synchronous>, transform_indices = @transform_6, window_bounds = array<i64: 1, 128>}, {transform_indices = @transform_7, window_bounds = array<i64: 8, 128>}]} {
    %c0 = arith.constant 0 : index
    %c0_0 = arith.constant 0 : index
    %0 = vector.load %arg1[%c0, %c0_0] : memref<8x4xf32, #tpu.memory_space<vmem>>, vector<8x4xf32>
    %c0_1 = arith.constant 0 : index
    %c0_2 = arith.constant 0 : index
    %1 = vector.load %arg2[%c0_1, %c0_2] : memref<4x256xf32, #tpu.memory_space<vmem>>, vector<4x256xf32>
    %2 = vector.extract_strided_slice %0 {offsets = [0, 0], sizes = [8, 1], strides = [1, 1]} : vector<8x4xf32> to vector<8x1xf32>
    %3 = vector.extract_strided_slice %1 {offsets = [0, 0], sizes = [1, 256], strides = [1, 1]} : vector<4x256xf32> to vector<1x256xf32>
    %4 = vector.broadcast %2 : vector<8x1xf32> to vector<8x256xf32>
    %5 = vector.broadcast %3 : vector<1x256xf32> to vector<8x256xf32>
    %6 = arith.mulf %4, %5 : vector<8x256xf32>
    %7 = vector.extract_strided_slice %0 {offsets = [0, 1], sizes = [8, 1], strides = [1, 1]} : vector<8x4xf32> to vector<8x1xf32>
    %8 = vector.extract_strided_slice %1 {offsets = [1, 0], sizes = [1, 256], strides = [1, 1]} : vector<4x256xf32> to vector<1x256xf32>
    %9 = vector.broadcast %7 : vector<8x1xf32> to vector<8x256xf32>
    %10 = vector.broadcast %8 : vector<1x256xf32> to vector<8x256xf32>
    %11 = arith.mulf %9, %10 : vector<8x256xf32>
    %12 = arith.addf %6, %11 : vector<8x256xf32>
    %13 = vector.extract_strided_slice %0 {offsets = [0, 2], sizes = [8, 1], strides = [1, 1]} : vector<8x4xf32> to vector<8x1xf32>
    %14 = vector.extract_strided_slice %1 {offsets = [2, 0], sizes = [1, 256], strides = [1, 1]} : vector<4x256xf32> to vector<1x256xf32>
    %15 = vector.broadcast %13 : vector<8x1xf32> to vector<8x256xf32>
    %16 = vector.broadcast %14 : vector<1x256xf32> to vector<8x256xf32>
    %17 = arith.mulf %15, %16 : vector<8x256xf32>
    %18 = arith.addf %12, %17 : vector<8x256xf32>
    %19 = vector.extract_strided_slice %0 {offsets = [0, 3], sizes = [8, 1], strides = [1, 1]} : vector<8x4xf32> to vector<8x1xf32>
    %20 = vector.extract_strided_slice %1 {offsets = [3, 0], sizes = [1, 256], strides = [1, 1]} : vector<4x256xf32> to vector<1x256xf32>
    %21 = vector.broadcast %19 : vector<8x1xf32> to vector<8x256xf32>
    %22 = vector.broadcast %20 : vector<1x256xf32> to vector<8x256xf32>
    %23 = arith.mulf %21, %22 : vector<8x256xf32>
    %24 = arith.addf %18, %23 : vector<8x256xf32>
    %c0_3 = arith.constant 0 : index
    %c0_4 = arith.constant 0 : index
    %25 = vector.load %arg3[%c0_3, %c0_4] : memref<1x256xf32, #tpu.memory_space<vmem>>, vector<1x256xf32>
    %26 = vector.broadcast %25 : vector<1x256xf32> to vector<8x256xf32>
    %27 = arith.addf %24, %26 : vector<8x256xf32>
    %cst = arith.constant 0.000000e+00 : f32
    %28 = vector.broadcast %cst : f32 to vector<8x256xf32>
    %29 = arith.maximumf %27, %28 : vector<8x256xf32>
    %30 = arith.truncf %29 : vector<8x256xf32> to vector<8x256xbf16>
    %c0_5 = arith.constant 0 : index
    %c0_6 = arith.constant 0 : index
    %31 = vector.load %arg4[%c0_5, %c0_6] : memref<256x256xbf16, #tpu.memory_space<vmem>>, vector<256x256xbf16>
    %cst_7 = arith.constant dense<0.000000e+00> : vector<8x256xf32>
    %32 = tpu.matmul %30, %31, %cst_7 {dimension_numbers = #tpu.dot_dimension_numbers<[1], [0], [0], [1], [0, 0, 1, 1], [], []>} : vector<8x256xbf16>, vector<256x256xbf16>, vector<8x256xf32> -> vector<8x256xf32>
    %c0_8 = arith.constant 0 : index
    %c0_9 = arith.constant 0 : index
    %33 = vector.load %arg5[%c0_8, %c0_9] : memref<1x256xf32, #tpu.memory_space<vmem>>, vector<1x256xf32>
    %34 = vector.broadcast %33 : vector<1x256xf32> to vector<8x256xf32>
    %35 = arith.addf %32, %34 : vector<8x256xf32>
    %cst_10 = arith.constant 0.000000e+00 : f32
    %36 = vector.broadcast %cst_10 : f32 to vector<8x256xf32>
    %37 = arith.maximumf %35, %36 : vector<8x256xf32>
    %38 = arith.truncf %37 : vector<8x256xf32> to vector<8x256xbf16>
    %c0_11 = arith.constant 0 : index
    %c0_12 = arith.constant 0 : index
    %39 = vector.load %arg6[%c0_11, %c0_12] : memref<256x128xbf16, #tpu.memory_space<vmem>>, vector<256x128xbf16>
    %cst_13 = arith.constant dense<0.000000e+00> : vector<8x128xf32>
    %40 = tpu.matmul %38, %39, %cst_13 {dimension_numbers = #tpu.dot_dimension_numbers<[1], [0], [0], [1], [0, 0, 1, 1], [], []>} : vector<8x256xbf16>, vector<256x128xbf16>, vector<8x128xf32> -> vector<8x128xf32>
    %c0_14 = arith.constant 0 : index
    %c0_15 = arith.constant 0 : index
    %41 = vector.load %arg7[%c0_14, %c0_15] : memref<1x128xf32, #tpu.memory_space<vmem>>, vector<1x128xf32>
    %42 = vector.broadcast %41 : vector<1x128xf32> to vector<8x128xf32>
    %43 = arith.addf %40, %42 : vector<8x128xf32>
    %c0_16 = arith.constant 0 : index
    %c0_17 = arith.constant 0 : index
    %44 = vector.load %arg8[%c0_16, %c0_17] : memref<8x128xf32, #tpu.memory_space<vmem>>, vector<8x128xf32>
    tpu.vector_store %arg8[%c0_16, %c0_17], %43 {strides = array<i32>} : memref<8x128xf32, #tpu.memory_space<vmem>>, vector<8x128xf32>,
    return
  }
  func.func @transform_0(%arg0: i32) -> (i32, i32) {
    %c0_i32 = arith.constant 0 : i32
    %c0_i32_0 = arith.constant 0 : i32
    return %arg0, %c0_i32 : i32, i32
  }
  func.func @transform_1(%arg0: i32) -> (i32, i32) {
    %c0_i32 = arith.constant 0 : i32
    %c0_i32_0 = arith.constant 0 : i32
    %c0_i32_1 = arith.constant 0 : i32
    return %c0_i32, %c0_i32_0 : i32, i32
  }
  func.func @transform_2(%arg0: i32) -> (i32, i32) {
    %c0_i32 = arith.constant 0 : i32
    %c0_i32_0 = arith.constant 0 : i32
    %c0_i32_1 = arith.constant 0 : i32
    return %c0_i32, %c0_i32_0 : i32, i32
  }
  func.func @transform_3(%arg0: i32) -> (i32, i32) {
    %c0_i32 = arith.constant 0 : i32
    %c0_i32_0 = arith.constant 0 : i32
    %c0_i32_1 = arith.constant 0 : i32
    return %c0_i32, %c0_i32_0 : i32, i32
  }
  func.func @transform_4(%arg0: i32) -> (i32, i32) {
    %c0_i32 = arith.constant 0 : i32
    %c0_i32_0 = arith.constant 0 : i32
    %c0_i32_1 = arith.constant 0 : i32
    return %c0_i32, %c0_i32_0 : i32, i32
  }
  func.func @transform_5(%arg0: i32) -> (i32, i32) {
    %c0_i32 = arith.constant 0 : i32
    %c0_i32_0 = arith.constant 0 : i32
    %c0_i32_1 = arith.constant 0 : i32
    return %c0_i32, %c0_i32_0 : i32, i32
  }
  func.func @transform_6(%arg0: i32) -> (i32, i32) {
    %c0_i32 = arith.constant 0 : i32
    %c0_i32_0 = arith.constant 0 : i32
    %c0_i32_1 = arith.constant 0 : i32
    return %c0_i32, %c0_i32_0 : i32, i32
  }
  func.func @transform_7(%arg0: i32) -> (i32, i32) {
    %c0_i32 = arith.constant 0 : i32
    %c0_i32_0 = arith.constant 0 : i32
    return %arg0, %c0_i32 : i32, i32
  }
}

</mosaic_0001>

<bundles_post_ra>
// kernel: agent_forward.1
= control target key start
LH: loop header
LB: loop body
LE: loop exit
PB: predicated region body
PF: predicated region fallthrough
CT: control target
= control target key end

     0   :  { %12 = vsyncpa [#allocation3], 0  ;;  %s892_s0 = inlined_call_operand.vmem [shape: f32[8,4], index: 0, kind: input, shape index: {}]   ;;  %s893_s1 = inlined_call_operand.vmem [shape: f32[4,256], index: 1, kind: input, shape index: {}]   ;;  %s894_s2 = inlined_call_operand.vmem [shape: f32[1,256], index: 2, kind: input, shape index: {}]   ;;  %s895_s3 = inlined_call_operand.hbm [shape: bf16[256,256], index: 3, kind: input, shape index: {}]   ;;  %s896_s4 = inlined_call_operand.vmem [shape: f32[1,256], index: 4, kind: input, shape index: {}]   ;;  %s897_s5 = inlined_call_operand.hbm [shape: bf16[256,128], index: 5, kind: input, shape index: {}]   ;;  %s898_s6 = inlined_call_operand.vmem [shape: f32[1,128], index: 6, kind: input, shape index: {}]   ;;  %s899_s7 = inlined_call_operand.vmem [shape: f32[8,128], index: 7, kind: output, shape index: {}]  }
   0x1   :  { %13 = vsyncpa [#allocation5], 0  ;;  %s804_s24 = smov [#allocation2]  }
   0x2   :  { %s25_s25 = sshll.u32 %s804_s24, 4  ;;  %s26_s25 = int_to_ptr.vmem [resolvable:$true] %s25_s25 }
   0x3   :  { %s768_s26 = scalar_lea.vmem %s26_s25, 4096  ;;  %p773_p1 = scmp.lt.s32.totalorder %s26_s25, %s26_s25 }
   0x4   :  { %p769_p0 = scmp.ne.s32.totalorder %s26_s25, %s768_s26  ;;  %p774_p2 = scmp.lt.s32.totalorder %s768_s26, %s768_s26 }
   0x6   :  { %p775_p3 = por %p774_p2, %p773_p1 }
   0x8   :  { %p776_p4 = pnand %p775_p3, %p769_p0 }
   0xa   :  { %779 = shalt.err (!%p776_p4)
}
   0xb   :  { %s805_s27 = smov 128   ;;  %s806_s28 = smov 8  }
   0xc   :  { %31 = dma.hbm_to_vmem [thread:$0]  %s895_s3, 4096, %s26_s25, [#allocation3], %s805_s27, %s805_s27, %s806_s28  }
   0xd   :  { %s807_s8 = smov [#allocation4]  }
   0xe   :  { %s39_s9 = sshll.u32 %s807_s8, 4  ;;  %s40_s9 = int_to_ptr.vmem [resolvable:$true] %s39_s9 }
   0xf   :  { %s788_s10 = scalar_lea.vmem %s40_s9, 2048  ;;  %p793_p6 = scmp.lt.s32.totalorder %s40_s9, %s40_s9 }
  0x10   :  { %p789_p5 = scmp.ne.s32.totalorder %s40_s9, %s788_s10  ;;  %p794_p7 = scmp.lt.s32.totalorder %s788_s10, %s788_s10 }
  0x12   :  { %p795_p8 = por %p794_p7, %p793_p6 }
  0x14   :  { %p796_p9 = pnand %p795_p8, %p789_p5 }
  0x16   :  { %799 = shalt.err (!%p796_p9)
}
  0x17   :  { %s808_s11 = smov 64   ;;  %s809_s12 = smov 4  }
  0x18   :  { %45 = dma.hbm_to_vmem [thread:$0]  %s897_s5, 2048, %s40_s9, [#allocation5], %s808_s11, %s808_s11, %s809_s12  }
  0x19   :  { %800 = dma.done.wait [#allocation3], 4096  }
  0x1a   :  { %801 = vsyncadd [#allocation3], 4294963200 }
  0x1b   :  { %802 = dma.done.wait [#allocation5], 2048  }
  0x1c   :  { %803 = vsyncadd [#allocation5], 4294965248  ;;  %v810_v0 = vmov 0   ;;  %v811_v1 = vmov 2   ;;  %v55_v2 = vld [vmem:[%s892_s0] sm:$0xff]  ;;  %v812_v7 = vmov 1   ;;  %v63_v49 = vlaneseq }
  0x1d   :  { %691 = vset.pattern.permute.xlu0 %v810_v0  ;;  %693 = vset.pattern.permute.xlu1 %v811_v1  ;;  %v696_v3 = vld [vmem:[#allocation2 + $0x74] ss:$8 sps:$4 sm:$0xff]   ;;  %v698_v4 = vld [vmem:[#allocation2 + $0x70] ss:$8 sps:$4 sm:$0xff]   ;;  %v699_v5 = vld [vmem:[#allocation2 + $0x64] ss:$8 sps:$4 sm:$0xff]  }
  0x1e   :  { %59 = vperm.xlu0 %691, %v55_v2   ;;  %110 = vperm.xlu1 %693, %v55_v2   ;;  %v701_v6 = vld [vmem:[#allocation2 + $0x60] ss:$8 sps:$4 sm:$0xff]   ;;  %v813_v8 = vmov 3   ;;  %v702_v9 = vld [vmem:[#allocation2 + $0x54] ss:$8 sps:$4 sm:$0xff]   ;;  %v64_v50 = vshrl.u32 %v63_v49, 7 }
  0x1f   :  { %383 = vmatprep.subr.bf16.mxu0 %v696_v3  ;;  %v704_v10 = vld [vmem:[#allocation2 + $0x50] ss:$8 sps:$4 sm:$0xff]   ;;  %v705_v11 = vld [vmem:[#allocation2 + $0x44] ss:$8 sps:$4 sm:$0xff]   ;;  %v707_v12 = vld [vmem:[#allocation2 + $0x40] ss:$8 sps:$4 sm:$0xff]  }
  0x20   :  { %384 = vmatpush1.bf16.msra.mxu0 %v698_v4  ;;  %v708_v13 = vld [vmem:[#allocation2 + $0x34] ss:$8 sps:$4 sm:$0xff]   ;;  %v710_v14 = vld [vmem:[#allocation2 + $0x30] ss:$8 sps:$4 sm:$0xff]   ;;  %v711_v15 = vld [vmem:[#allocation2 + $0x24] ss:$8 sps:$4 sm:$0xff]  }
  0x21   :  { %385 = vmatprep.subr.bf16.mxu0 %v699_v5  ;;  %v713_v16 = vld [vmem:[#allocation2 + $0x20] ss:$8 sps:$4 sm:$0xff]   ;;  %v714_v17 = vld [vmem:[#allocation2 + $0x14] ss:$8 sps:$4 sm:$0xff]   ;;  %v716_v18 = vld [vmem:[#allocation2 + $0x10] ss:$8 sps:$4 sm:$0xff]  }
  0x22   :  { %692 = vset.pattern.permute.xlu0 %v812_v7  ;;  %694 = vset.pattern.permute.xlu1 %v813_v8  ;;  %v717_v19 = vld [vmem:[#allocation2 + $0x4] ss:$8 sps:$4 sm:$0xff]   ;;  %v744_v20 = vld [vmem:[#allocation4 + $0x78] sm:$0xff]   ;;  %v746_v22 = vld [vmem:[#allocation4 + $0x70] sm:$0xff]   ;;  %v863_v51 = vsub.s32 0, %v64_v50  ;;  %v69_v52 = vsub.s32 4, %v64_v50 }
  0x23   :  { %84 = vperm.xlu0 %692, %v55_v2   ;;  %136 = vperm.xlu1 %694, %v55_v2   ;;  %v745_v21 = vld [vmem:[#allocation4 + $0x38] sm:$0xff]   ;;  %v747_v23 = vld [vmem:[#allocation4 + $0x30] sm:$0xff]   ;;  %v748_v24 = vld [vmem:[#allocation4 + $0x68] sm:$0xff]   ;;  %v865_v53 = vsub.s32 1, %v64_v50  ;;  %v93_v54 = vsub.s32 5, %v64_v50  ;;  %v115_v56 = vsub.s32 2, %v64_v50 }
  0x24   :  { %386 = vmatpush1.bf16.msra.mxu0 %v701_v6  ;;  %659 = vmatprep.subr.bf16.mxu1 %v744_v20  ;;  %v719_v25 = vld [vmem:[#allocation2] ss:$8 sps:$4 sm:$0xff]   ;;  %v720_v26 = vld [vmem:[#allocation2 + $0xf4] ss:$8 sps:$4 sm:$0xff]   ;;  %v722_v29 = vld [vmem:[#allocation2 + $0xf0] ss:$8 sps:$4 sm:$0xff]  }
  0x25   :  { %387 = vmatprep.subr.bf16.mxu0 %v702_v9  ;;  %660 = vmatpush3.bf16.msra.mxu1 %v745_v21  ;;  %v749_v27 = vld [vmem:[#allocation4 + $0x28] sm:$0xff]   ;;  %v750_v28 = vld [vmem:[#allocation4 + $0x60] sm:$0xff]   ;;  %v752_v33 = vld [vmem:[#allocation4 + $0x58] sm:$0xff]   ;;  %v119_v57 = vsub.s32 6, %v64_v50  ;;  %v141_v58 = vsub.s32 3, %v64_v50  ;;  %v145_v59 = vsub.s32 7, %v64_v50 }
  0x26   :  { %661 = vmatprep.subr.bf16.mxu1 %v746_v22  ;;  %v723_v30 = vld [vmem:[#allocation2 + $0xe4] ss:$8 sps:$4 sm:$0xff]   ;;  %v725_v31 = vld [vmem:[#allocation2 + $0xe0] ss:$8 sps:$4 sm:$0xff]   ;;  %v726_v34 = vld [vmem:[#allocation2 + $0xd4] ss:$8 sps:$4 sm:$0xff]  }
  0x27   :  { %695 = vset.pattern.permute.xlu0 %v813_v8  ;;  %v751_v32 = vld [vmem:[#allocation4 + $0x20] sm:$0xff]   ;;  %v753_v35 = vld [vmem:[#allocation4 + $0x18] sm:$0xff]   ;;  %v754_v36 = vld [vmem:[#allocation4 + $0x50] sm:$0xff]  }
  0x28   :  { %388 = vmatpush1.bf16.msra.mxu0 %v704_v10  ;;  %v728_v37 = vld [vmem:[#allocation2 + $0xd0] ss:$8 sps:$4 sm:$0xff]   ;;  %v729_v38 = vld [vmem:[#allocation2 + $0xc4] ss:$8 sps:$4 sm:$0xff]   ;;  %v731_v40 = vld [vmem:[#allocation2 + $0xc0] ss:$8 sps:$4 sm:$0xff]  }
  0x29   :  { %389 = vmatprep.subr.bf16.mxu0 %v705_v11  ;;  %662 = vmatpush3.bf16.msra.mxu1 %v747_v23  ;;  %v755_v39 = vld [vmem:[#allocation4 + $0x10] sm:$0xff]   ;;  %v735_v43 = vld [vmem:[#allocation2 + $0xa4] ss:$8 sps:$4 sm:$0xff]   ;;  %v737_v44 = vld [vmem:[#allocation2 + $0xa0] ss:$8 sps:$4 sm:$0xff]  }
  0x2a   :  { %663 = vmatprep.subr.bf16.mxu1 %v748_v24  ;;  %v732_v41 = vld [vmem:[#allocation2 + $0xb4] ss:$8 sps:$4 sm:$0xff]   ;;  %v734_v42 = vld [vmem:[#allocation2 + $0xb0] ss:$8 sps:$4 sm:$0xff]   ;;  %v741_v47 = vld [vmem:[#allocation2 + $0x84] ss:$8 sps:$4 sm:$0xff]  }
  0x2b   :  { %v738_v45 = vld [vmem:[#allocation2 + $0x94] ss:$8 sps:$4 sm:$0xff]   ;;  %v740_v46 = vld [vmem:[#allocation2 + $0x90] ss:$8 sps:$4 sm:$0xff]   ;;  %v743_v48 = vld [vmem:[#allocation2 + $0x80] ss:$8 sps:$4 sm:$0xff]  }
  0x2c   :  { %390 = vmatpush1.bf16.msra.mxu0 %v707_v12  ;;  %v56_v55 = vld [vmem:[%s893_s1] sm:$0xff] }
  0x2d   :  { %391 = vmatprep.subr.bf16.mxu0 %v708_v13  ;;  %664 = vmatpush3.bf16.msra.mxu1 %v749_v27  ;;  %v66_v60 = vrot.slane %v56_v55, %v863_v51  ;;  %v70_v61 = vrot.slane %v56_v55, %v69_v52  ;;  %v90_v62 = vrot.slane %v56_v55, %v865_v53  ;;  %v161_v22 = vld [vmem:[%s894_s2] sm:$0x3] }
  0x2e   :  { %665 = vmatprep.subr.bf16.mxu1 %v750_v28  ;;  %v94_v63 = vrot.slane %v56_v55, %v93_v54  ;;  %v116_v0 = vrot.slane %v56_v55, %v115_v56  ;;  %v120_v1 = vrot.slane %v56_v55, %v119_v57  ;;  %v142_v4 = vrot.slane %v56_v55, %v141_v58 }
  0x2f   :  { %v146_v5 = vrot.slane %v56_v55, %v145_v59  ;;  %v76_v6 = vrot.slane %v66_v60, %v863_v51  ;;  %v80_v7 = vrot.slane %v70_v61, %v863_v51  ;;  %v100_v8 = vrot.slane %v90_v62, %v865_v53  ;;  %v642_v59 = vld [vmem:[%s898_s6] ss:$0 sm:$0xff] }
  0x30   :  { %392 = vmatpush1.bf16.msra.mxu0 %v710_v14  ;;  %v104_v9 = vrot.slane %v94_v63, %v865_v53  ;;  %v126_v10 = vrot.slane %v116_v0, %v115_v56  ;;  %v130_v11 = vrot.slane %v120_v1, %v115_v56  ;;  %v152_v12 = vrot.slane %v142_v4, %v141_v58 }
  0x31   :  { %393 = vmatprep.subr.bf16.mxu0 %v711_v15  ;;  %666 = vmatpush3.bf16.msra.mxu1 %v751_v32  ;;  %v156_v13 = vrot.slane %v146_v5, %v141_v58 }
  0x32   :  { %667 = vmatprep.subr.bf16.mxu1 %v752_v33 }
  0x34   :  { %394 = vmatpush1.bf16.msra.mxu0 %v713_v16 }
  0x35   :  { %395 = vmatprep.subr.bf16.mxu0 %v714_v17  ;;  %668 = vmatpush3.bf16.msra.mxu1 %v753_v35 }
  0x36   :  { %669 = vmatprep.subr.bf16.mxu1 %v754_v36 }
  0x38   :  { %396 = vmatpush1.bf16.msra.mxu0 %v716_v18 }
  0x39   :  { %397 = vmatprep.subr.bf16.mxu0 %v717_v19  ;;  %670 = vmatpush3.bf16.msra.mxu1 %v755_v39  ;;  %v756_v39 = vld [vmem:[#allocation4 + $0x48] sm:$0xff]  }
  0x3a   :  { %671 = vmatprep.subr.bf16.mxu1 %v756_v39 }
  0x3c   :  { %398 = vmatpush1.bf16.msra.mxu0 %v719_v25 }
  0x3d   :  { %399 = vmatprep.subr.bf16.mxu0 %v720_v26 }
  0x40   :  { %400 = vmatpush2.bf16.msra.mxu0 %v722_v29  ;;  %v166_v29 = vrot.slane %v161_v22, %v863_v51 }
  0x41   :  { %401 = vmatprep.subr.bf16.mxu0 %v723_v30  ;;  %v170_v30 = vrot.slane %v161_v22, %v865_v53 }
  0x44   :  { %402 = vmatpush2.bf16.msra.mxu0 %v725_v31 }
  0x45   :  { %403 = vmatprep.subr.bf16.mxu0 %v726_v34 }
  0x48   :  { %404 = vmatpush2.bf16.msra.mxu0 %v728_v37 }
  0x49   :  { %405 = vmatprep.subr.bf16.mxu0 %v729_v38 }
  0x4c   :  { %406 = vmatpush2.bf16.msra.mxu0 %v731_v40  ;;  %v757_v40 = vld [vmem:[#allocation4 + $0x8] sm:$0xff]  }
  0x4d   :  { %407 = vmatprep.subr.bf16.mxu0 %v732_v41  ;;  %672 = vmatpush3.bf16.msra.mxu1 %v757_v40  ;;  %v758_v41 = vld [vmem:[#allocation4 + $0x40] sm:$0xff]  }
  0x4e   :  { %673 = vmatprep.subr.bf16.mxu1 %v758_v41 }
  0x50   :  { %408 = vmatpush2.bf16.msra.mxu0 %v734_v42  ;;  %v759_v42 = vld [vmem:[#allocation4] sm:$0xff]  }
  0x51   :  { %409 = vmatprep.subr.bf16.mxu0 %v735_v43  ;;  %674 = vmatpush3.bf16.msra.mxu1 %v759_v42  ;;  %v211_v43 = vld [vmem:[%s896_s4] sm:$0x3] }
  0x54   :  { %410 = vmatpush2.bf16.msra.mxu0 %v737_v44  ;;  %v216_v44 = vrot.slane %v211_v43, %v863_v51 }
  0x55   :  { %411 = vmatprep.subr.bf16.mxu0 %v738_v45  ;;  %v220_v45 = vrot.slane %v211_v43, %v865_v53 }
  0x58   :  { %412 = vmatpush2.bf16.msra.mxu0 %v740_v46 }
  0x59   :  { %413 = vmatprep.subr.bf16.mxu0 %v741_v47 }
  0x5c   :  { %414 = vmatpush2.bf16.msra.mxu0 %v743_v48 }
  0x99   :  { %v60_v2 = vpop.permute.xlu0 %59  ;;  %v111_v3 = vpop.permute.xlu1 %110 }
  0x9a   :  { %v81_v16 = vmul.f32 %v76_v6, %v60_v2  ;;  %v82_v17 = vmul.f32 %v80_v7, %v60_v2  ;;  %v131_v20 = vmul.f32 %v126_v10, %v111_v3  ;;  %v132_v21 = vmul.f32 %v130_v11, %v111_v3 }
  0x9e   :  { %v85_v14 = vpop.permute.xlu0 %84  ;;  %v137_v15 = vpop.permute.xlu1 %136 }
  0x9f   :  { %v105_v18 = vmul.f32 %v100_v8, %v85_v14  ;;  %v106_v19 = vmul.f32 %v104_v9, %v85_v14  ;;  %v157_v25 = vmul.f32 %v152_v12, %v137_v15  ;;  %v158_v26 = vmul.f32 %v156_v13, %v137_v15 }
  0xa1   :  { %v107_v23 = vadd.f32 %v105_v18, %v81_v16  ;;  %v108_v24 = vadd.f32 %v106_v19, %v82_v17 }
  0xa3   :  { %v133_v27 = vadd.f32 %v131_v20, %v107_v23  ;;  %v134_v28 = vadd.f32 %v132_v21, %v108_v24 }
  0xa5   :  { %v159_v31 = vadd.f32 %v157_v25, %v133_v27  ;;  %v160_v32 = vadd.f32 %v158_v26, %v134_v28 }
  0xa7   :  { %v174_v33 = vadd.f32 %v170_v30, %v160_v32  ;;  %v173_v34 = vadd.f32 %v166_v29, %v159_v31 }
  0xa9   :  { %v176_v35 = vmax.f32 %v174_v33, 0.0  ;;  %v175_v36 = vmax.f32 %v173_v34, 0.0 }
  0xab   :  { %v178_v37 = vpack.c.bf16 %v176_v35, %v176_v35  ;;  %v177_v38 = vpack.c.bf16 %v175_v36, %v175_v36 }
  0xad   :  { %415 = vmatprep.mubr.bf16.mxu0 %v178_v37 }
  0xae   :  { %416 = vmatmul.mubr.bf16.vlgmr.msra.gmra.mxu0 %v177_v38 }
 0x16e   :  { %v417_v46 = vpop.f32.mrf.mxu0 }
 0x16f   :  { %v418_v47 = vadd.f32 %v417_v46, %v216_v44 }
 0x170   :  { %v419_v48 = vpop.f32.mrf.mxu0 }
 0x171   :  { %v420_v49 = vadd.f32 %v419_v48, %v220_v45  ;;  %v424_v50 = vmax.f32 %v418_v47, 0.0 }
 0x172   :  { %v421_v52 = vpop.f32.mrf.mxu0 }
 0x173   :  { %v425_v54 = vmax.f32 %v420_v49, 0.0  ;;  %v426_v57 = vpack.c.bf16 %v424_v50, %v424_v50 }
 0x174   :  { %v422_v55 = vpop.f32.mrf.mxu0 }
 0x175   :  { %v427_v56 = vpack.c.bf16 %v425_v54, %v425_v54 }
 0x177   :  { %595 = vmatprep.mubr.bf16.mxu1 %v427_v56 }
 0x178   :  { %596 = vmatmul.mubr.bf16.vlgmr.msra.gmra.mxu1 %v426_v57 }
 0x238   :  { %v675_v58 = vpop.f32.mrf.mxu1 }
 0x23a   :  { %v676_v51 = vpop.f32.mrf.mxu1 }
 0x23b   :  { %v677_v60 = vadd.f32 %v676_v51, %v675_v58 }
 0x23c   :  { %v678_v53 = vpop.f32.mrf.mxu1 }
 0x23d   :  { %v598_v61 = vadd.f32 %v677_v60, %v642_v59 }
 0x23e   :  { %v679_v62 = vpop.f32.mrf.mxu1 }
 0x23f   :  { %603 = vst [vmem:[%s899_s7] sm:$0xff] %v598_v61 }
 0x240   :  { %608 = vsyncpa [#allocation3], 1 }
 0x241   :  { %609 = vsyncpa [#allocation5], 1 }

</bundles_post_ra>
